<compile_context>
chip_gen: v5e
topology: v5e:2x2
jax: 0.10.0
libtpu: 0.0.40
codegen_flags: <defaults>
</compile_context>

<pallas_src>
import jax
import jax.numpy as jnp
import numpy as np
from jax.experimental import pallas as pl
from jax.experimental.pallas import tpu as pltpu

NUM_OPS = 6  # ["zero", "identity", "ffn", "attn_x1", "attn_s2", "cross_gate"]


# --------------------------------------------------------------------------
# Fused Pallas kernel: the whole Cell_s forward (all steps) in one call.
# grid = (steps,), sequential ("arbitrary"); state carried in VMEM scratch.
# --------------------------------------------------------------------------
def cell_s_kernel(w_ref,        # SMEM (steps, NUM_OPS)  architecture weights (scalar-prefetched)
                  s0_ref,       # VMEM (B, d)            initial state
                  x1_ref,       # VMEM (B, L, d)         context sequence 1
                  x2_ref,       # VMEM (B, d)            auxiliary vector
                  s2_ref,       # VMEM (B, L, d)         context sequence 2
                  wproj_ref,    # VMEM (1, d, 4d)        fused [wffn | wq1 | wq2 | wg] for this step
                  bffn_ref,     # VMEM (1, 1, d)         ffn bias for this step
                  out_ref,      # VMEM (1, B, d)         this step's output state
                  state_ref):   # VMEM scratch (B, d) f32, carries state across grid steps
    step = pl.program_id(0)

    @pl.when(step == 0)
    def _():
        state_ref[...] = s0_ref[...].astype(jnp.float32)

    x = state_ref[...]                                   # (B, d) f32
    ctx1 = x1_ref[...].astype(jnp.float32)               # (B, L, d)
    ctx2 = s2_ref[...].astype(jnp.float32)               # (B, L, d)
    other = x2_ref[...].astype(jnp.float32)               # (B, d)
    B, d = x.shape
    inv_sqrt_d = 1.0 / jnp.sqrt(jnp.float32(d))

    # One fused, lane-dense projection matmul for all four (d,d) branches.
    proj = jnp.dot(x, wproj_ref[0], preferred_element_type=jnp.float32)   # (B, 4d)
    ffn_pre = proj[:, 0 * d:1 * d]
    q1      = proj[:, 1 * d:2 * d]
    q2      = proj[:, 2 * d:3 * d]
    g_pre   = proj[:, 3 * d:4 * d]

    def attend(q, kv):
        # M=1 attention: VPU broadcast-multiply + reduce; MXU stays free.
        scores = jnp.sum(q[:, None, :] * kv, axis=-1) * inv_sqrt_d        # (B, L)
        scores = scores - jnp.max(scores, axis=-1, keepdims=True)
        p = jnp.exp(scores)
        p = p * pl.reciprocal(jnp.sum(p, axis=-1, keepdims=True), approx=True)
        return jnp.sum(p[:, :, None] * kv, axis=1)                        # (B, d)

    op_ffn  = jnp.maximum(ffn_pre + bffn_ref[0], 0.0)
    op_att1 = attend(q1, ctx1)
    op_att2 = attend(q2, ctx2)
    op_gate = jax.nn.sigmoid(g_pre) * other

    # Architecture-weighted sum; the "zero" primitive (index 0) contributes
    # exactly nothing, so it is omitted.
    out = (w_ref[step, 1] * x +
           w_ref[step, 2] * op_ffn +
           w_ref[step, 3] * op_att1 +
           w_ref[step, 4] * op_att2 +
           w_ref[step, 5] * op_gate)

    state_ref[...] = out
    out_ref[0] = out.astype(out_ref.dtype)


# --------------------------------------------------------------------------
# Wrappers
# --------------------------------------------------------------------------
def cell_s_forward(s0, x1, x2, s2, weights, wproj_all, bffn_all):
    """Cell_s.forward: returns the full list of states (len == steps + 1)."""
    steps = weights.shape[0]
    B, d = s0.shape
    L = x1.shape[1]

    grid_spec = pltpu.PrefetchScalarGridSpec(
        num_scalar_prefetch=1,            # architecture weights -> SMEM
        grid=(steps,),
        in_specs=[
            pl.BlockSpec((B, d),        lambda i, w: (0, 0)),      # s0 (resident)
            pl.BlockSpec((B, L, d),     lambda i, w: (0, 0, 0)),   # x1 (resident)
            pl.BlockSpec((B, d),        lambda i, w: (0, 0)),      # x2 (resident)
            pl.BlockSpec((B, L, d),     lambda i, w: (0, 0, 0)),   # s2 (resident)
            pl.BlockSpec((1, d, 4 * d), lambda i, w: (i, 0, 0)),   # fused per-step proj
            pl.BlockSpec((1, 1, d),     lambda i, w: (i, 0, 0)),   # per-step ffn bias
        ],
        out_specs=pl.BlockSpec((1, B, d), lambda i, w: (i, 0, 0)),
        scratch_shapes=[pltpu.VMEM((B, d), jnp.float32)],           # state carry
    )

    out = pl.pallas_call(
        cell_s_kernel,
        out_shape=jax.ShapeDtypeStruct((steps, B, d), s0.dtype),
        grid_spec=grid_spec,
        compiler_params=pltpu.CompilerParams(
            dimension_semantics=("arbitrary",)),   # sequential carry over steps
    )(weights.astype(jnp.float32), s0, x1, x2, s2, wproj_all, bffn_all)

    return [s0] + [out[i] for i in range(steps)]


def cell_s_reference(s0, x1, x2, s2, weights, wproj_all, bffn_all):
    """Pure-JAX reference for correctness checking."""
    d = s0.shape[-1]
    inv_sqrt_d = 1.0 / jnp.sqrt(jnp.float32(d))

    def attend(q, kv):
        scores = jnp.einsum('bd,bld->bl', q, kv) * inv_sqrt_d
        p = jax.nn.softmax(scores, axis=-1)
        return jnp.einsum('bl,bld->bd', p, kv)

    states = [s0]
    for i in range(weights.shape[0]):
        x = states[i]
        proj = x @ wproj_all[i]
        ffn_pre, q1, q2, g_pre = (proj[:, 0:d], proj[:, d:2 * d],
                                  proj[:, 2 * d:3 * d], proj[:, 3 * d:4 * d])
        ops = [
            jnp.zeros_like(x),                         # zero
            x,                                         # identity
            jax.nn.relu(ffn_pre + bffn_all[i]),        # ffn
            attend(q1, x1),                            # attn over x1
            attend(q2, s2),                            # attn over s2
            jax.nn.sigmoid(g_pre) * x2,                # cross gate
        ]
        states.append(sum(w * op for w, op in zip(weights[i], ops)))
    return states


def init_params(key, d_model, steps):
    """Deterministic synthetic parameters: fused (d, 4d) projection per step."""
    scale = 1.0 / jnp.sqrt(jnp.float32(d_model))
    wprojs, bffns = [], []
    for i in range(steps):
        k = jax.random.fold_in(key, i)
        ks = jax.random.split(k, 5)
        wffn = jax.random.normal(ks[0], (d_model, d_model), jnp.float32) * scale
        wq1  = jax.random.normal(ks[1], (d_model, d_model), jnp.float32) * scale
        wq2  = jax.random.normal(ks[2], (d_model, d_model), jnp.float32) * scale
        wg   = jax.random.normal(ks[3], (d_model, d_model), jnp.float32) * scale
        wprojs.append(jnp.concatenate([wffn, wq1, wq2, wg], axis=-1))   # (d, 4d)
        bffns.append(jax.random.normal(ks[4], (1, d_model), jnp.float32) * 0.1)
    return jnp.stack(wprojs, axis=0), jnp.stack(bffns, axis=0)          # (steps,d,4d),(steps,1,d)


# --------------------------------------------------------------------------
if __name__ == "__main__":
    B, L, d_model, steps = 2, 8, 32, 2

    key = jax.random.PRNGKey(0)
    k_in, k_par, k_alpha = jax.random.split(key, 3)
    ki = jax.random.split(k_in, 4)

    s0 = jax.random.normal(ki[0], (B, d_model), jnp.float32)
    x1 = jax.random.normal(ki[1], (B, L, d_model), jnp.float32)
    x2 = jax.random.normal(ki[2], (B, d_model), jnp.float32)
    s2 = jax.random.normal(ki[3], (B, L, d_model), jnp.float32)

    # architecture weights (softmax over ops, as in DARTS search)
    alphas = jax.random.normal(k_alpha, (steps, NUM_OPS), jnp.float32)
    weights = jax.nn.softmax(alphas, axis=-1)

    wproj_all, bffn_all = init_params(k_par, d_model, steps)

    states = cell_s_forward(s0, x1, x2, s2, weights, wproj_all, bffn_all)
    for st in states:
        jax.block_until_ready(st)

    assert len(states) == steps + 1
    assert all(st.shape == (B, d_model) for st in states)

    # correctness check against pure-JAX reference
    ref_states = cell_s_reference(s0, x1, x2, s2, weights, wproj_all, bffn_all)
    for got, ref in zip(states[1:], ref_states[1:]):
        np.testing.assert_allclose(np.asarray(got), np.asarray(ref),
                                   rtol=2e-2, atol=2e-2)

    print("KERNEL_OK")
</pallas_src>

<mosaic_0001>
module attributes {stable_mosaic.version = 11 : i64} {
  func.func @cell_s_kernel(%arg0: i32, %arg1: memref<2x6xf32, #tpu.memory_space<smem>>, %arg2: memref<2x32xf32, #tpu.memory_space<vmem>>, %arg3: memref<2x8x32xf32, #tpu.memory_space<vmem>>, %arg4: memref<2x32xf32, #tpu.memory_space<vmem>>, %arg5: memref<2x8x32xf32, #tpu.memory_space<vmem>>, %arg6: memref<1x32x128xf32, #tpu.memory_space<vmem>>, %arg7: memref<1x1x32xf32, #tpu.memory_space<vmem>>, %arg8: memref<1x2x32xf32, #tpu.memory_space<vmem>>, %arg9: memref<2x32xf32, #tpu.memory_space<vmem>>) attributes {dimension_semantics = [#tpu.dimension_semantics<arbitrary>], iteration_bounds = array<i64: 2>, scalar_prefetch = 1 : i64, scratch_operands = 1 : i64, tpu.core_type = #tpu.core_type<tc>, window_params = [{pipeline_mode = #tpu.pipeline_mode<synchronous>, transform_indices = @transform_0, window_bounds = array<i64: 2, 32>}, {pipeline_mode = #tpu.pipeline_mode<synchronous>, transform_indices = @transform_1, window_bounds = array<i64: 2, 8, 32>}, {pipeline_mode = #tpu.pipeline_mode<synchronous>, transform_indices = @transform_2, window_bounds = array<i64: 2, 32>}, {pipeline_mode = #tpu.pipeline_mode<synchronous>, transform_indices = @transform_3, window_bounds = array<i64: 2, 8, 32>}, {transform_indices = @transform_4, window_bounds = array<i64: 1, 32, 128>}, {transform_indices = @transform_5, window_bounds = array<i64: 1, 1, 32>}, {transform_indices = @transform_6, window_bounds = array<i64: 1, 2, 32>}]} {
    %c0_i32 = arith.constant 0 : i32
    %0 = arith.cmpi eq, %arg0, %c0_i32 : i32
    %1 = arith.extui %0 : i1 to i32
    %c0_i32_0 = arith.constant 0 : i32
    %2 = arith.cmpi ne, %1, %c0_i32_0 : i32
    scf.if %2 {
      %c0_33 = arith.constant 0 : index
      %c0_34 = arith.constant 0 : index
      %96 = vector.load %arg2[%c0_33, %c0_34] : memref<2x32xf32, #tpu.memory_space<vmem>>, vector<2x32xf32>
      %c0_35 = arith.constant 0 : index
      %c0_36 = arith.constant 0 : index
      %97 = vector.load %arg9[%c0_35, %c0_36] : memref<2x32xf32, #tpu.memory_space<vmem>>, vector<2x32xf32>
      tpu.vector_store %arg9[%c0_35, %c0_36], %96 {strides = array<i32>} : memref<2x32xf32, #tpu.memory_space<vmem>>, vector<2x32xf32>,
    } else {
    }
    %c0 = arith.constant 0 : index
    %c0_1 = arith.constant 0 : index
    %3 = vector.load %arg9[%c0, %c0_1] : memref<2x32xf32, #tpu.memory_space<vmem>>, vector<2x32xf32>
    %c0_2 = arith.constant 0 : index
    %c0_3 = arith.constant 0 : index
    %c0_4 = arith.constant 0 : index
    %4 = vector.load %arg3[%c0_2, %c0_3, %c0_4] : memref<2x8x32xf32, #tpu.memory_space<vmem>>, vector<2x8x32xf32>
    %c0_5 = arith.constant 0 : index
    %c0_6 = arith.constant 0 : index
    %c0_7 = arith.constant 0 : index
    %5 = vector.load %arg5[%c0_5, %c0_6, %c0_7] : memref<2x8x32xf32, #tpu.memory_space<vmem>>, vector<2x8x32xf32>
    %c0_8 = arith.constant 0 : index
    %c0_9 = arith.constant 0 : index
    %6 = vector.load %arg4[%c0_8, %c0_9] : memref<2x32xf32, #tpu.memory_space<vmem>>, vector<2x32xf32>
    %cst = arith.constant 3.200000e+01 : f32
    %7 = math.sqrt %cst : f32
    %cst_10 = arith.constant 1.000000e+00 : f32
    %8 = arith.divf %cst_10, %7 : f32
    %c0_11 = arith.constant 0 : index
    %c0_12 = arith.constant 0 : index
    %c0_13 = arith.constant 0 : index
    %9 = vector.load %arg6[%c0_11, %c0_12, %c0_13] : memref<1x32x128xf32, #tpu.memory_space<vmem>>, vector<1x32x128xf32>
    %10 = vector.shape_cast %9 : vector<1x32x128xf32> to vector<32x128xf32>
    %cst_14 = arith.constant dense<0.000000e+00> : vector<2x128xf32>
    %11 = tpu.matmul %3, %10, %cst_14 {dimension_numbers = #tpu.dot_dimension_numbers<[1], [0], [0], [1], [0, 0, 1, 1], [], []>} : vector<2x32xf32>, vector<32x128xf32>, vector<2x128xf32> -> vector<2x128xf32>
    %12 = vector.extract_strided_slice %11 {offsets = [0, 0], sizes = [2, 32], strides = [1, 1]} : vector<2x128xf32> to vector<2x32xf32>
    %13 = vector.extract_strided_slice %11 {offsets = [0, 32], sizes = [2, 32], strides = [1, 1]} : vector<2x128xf32> to vector<2x32xf32>
    %14 = vector.extract_strided_slice %11 {offsets = [0, 64], sizes = [2, 32], strides = [1, 1]} : vector<2x128xf32> to vector<2x32xf32>
    %15 = vector.extract_strided_slice %11 {offsets = [0, 96], sizes = [2, 32], strides = [1, 1]} : vector<2x128xf32> to vector<2x32xf32>
    %c0_15 = arith.constant 0 : index
    %c0_16 = arith.constant 0 : index
    %c0_17 = arith.constant 0 : index
    %16 = vector.load %arg7[%c0_15, %c0_16, %c0_17] : memref<1x1x32xf32, #tpu.memory_space<vmem>>, vector<1x1x32xf32>
    %17 = vector.shape_cast %16 : vector<1x1x32xf32> to vector<1x32xf32>
    %18 = vector.broadcast %17 : vector<1x32xf32> to vector<2x32xf32>
    %19 = arith.addf %12, %18 : vector<2x32xf32>
    %cst_18 = arith.constant 0.000000e+00 : f32
    %20 = vector.broadcast %cst_18 : f32 to vector<2x32xf32>
    %21 = arith.maximumf %19, %20 : vector<2x32xf32>
    %22 = vector.shape_cast %13 : vector<2x32xf32> to vector<2x1x32xf32>
    %23 = vector.broadcast %22 : vector<2x1x32xf32> to vector<2x8x32xf32>
    %24 = arith.mulf %23, %4 : vector<2x8x32xf32>
    %cst_19 = arith.constant dense<0.000000e+00> : vector<2x8xf32>
    %25 = vector.multi_reduction <add>, %24, %cst_19 [2] : vector<2x8x32xf32> to vector<2x8xf32>
    %26 = vector.broadcast %8 : f32 to vector<2x8xf32>
    %27 = arith.mulf %25, %26 : vector<2x8xf32>
    %cst_20 = arith.constant dense<0xFF800000> : vector<2xf32>
    %28 = vector.multi_reduction <maximumf>, %27, %cst_20 [1] : vector<2x8xf32> to vector<2xf32>
    %29 = vector.shape_cast %28 : vector<2xf32> to vector<2x1xf32>
    %30 = vector.broadcast %29 : vector<2x1xf32> to vector<2x8xf32>
    %31 = arith.subf %27, %30 : vector<2x8xf32>
    %32 = math.exp %31 : vector<2x8xf32>
    %cst_21 = arith.constant dense<0.000000e+00> : vector<2xf32>
    %33 = vector.multi_reduction <add>, %32, %cst_21 [1] : vector<2x8xf32> to vector<2xf32>
    %34 = vector.shape_cast %33 : vector<2xf32> to vector<2x1xf32>
    %35 = tpu.reciprocal %34 {approx = true} : vector<2x1xf32> -> vector<2x1xf32>
    %36 = vector.broadcast %35 : vector<2x1xf32> to vector<2x8xf32>
    %37 = arith.mulf %32, %36 : vector<2x8xf32>
    %38 = vector.shape_cast %37 : vector<2x8xf32> to vector<2x8x1xf32>
    %39 = vector.broadcast %38 : vector<2x8x1xf32> to vector<2x8x32xf32>
    %40 = arith.mulf %39, %4 : vector<2x8x32xf32>
    %cst_22 = arith.constant dense<0.000000e+00> : vector<2x32xf32>
    %41 = vector.multi_reduction <add>, %40, %cst_22 [1] : vector<2x8x32xf32> to vector<2x32xf32>
    %42 = vector.shape_cast %14 : vector<2x32xf32> to vector<2x1x32xf32>
    %43 = vector.broadcast %42 : vector<2x1x32xf32> to vector<2x8x32xf32>
    %44 = arith.mulf %43, %5 : vector<2x8x32xf32>
    %cst_23 = arith.constant dense<0.000000e+00> : vector<2x8xf32>
    %45 = vector.multi_reduction <add>, %44, %cst_23 [2] : vector<2x8x32xf32> to vector<2x8xf32>
    %46 = vector.broadcast %8 : f32 to vector<2x8xf32>
    %47 = arith.mulf %45, %46 : vector<2x8xf32>
    %cst_24 = arith.constant dense<0xFF800000> : vector<2xf32>
    %48 = vector.multi_reduction <maximumf>, %47, %cst_24 [1] : vector<2x8xf32> to vector<2xf32>
    %49 = vector.shape_cast %48 : vector<2xf32> to vector<2x1xf32>
    %50 = vector.broadcast %49 : vector<2x1xf32> to vector<2x8xf32>
    %51 = arith.subf %47, %50 : vector<2x8xf32>
    %52 = math.exp %51 : vector<2x8xf32>
    %cst_25 = arith.constant dense<0.000000e+00> : vector<2xf32>
    %53 = vector.multi_reduction <add>, %52, %cst_25 [1] : vector<2x8xf32> to vector<2xf32>
    %54 = vector.shape_cast %53 : vector<2xf32> to vector<2x1xf32>
    %55 = tpu.reciprocal %54 {approx = true} : vector<2x1xf32> -> vector<2x1xf32>
    %56 = vector.broadcast %55 : vector<2x1xf32> to vector<2x8xf32>
    %57 = arith.mulf %52, %56 : vector<2x8xf32>
    %58 = vector.shape_cast %57 : vector<2x8xf32> to vector<2x8x1xf32>
    %59 = vector.broadcast %58 : vector<2x8x1xf32> to vector<2x8x32xf32>
    %60 = arith.mulf %59, %5 : vector<2x8x32xf32>
    %cst_26 = arith.constant dense<0.000000e+00> : vector<2x32xf32>
    %61 = vector.multi_reduction <add>, %60, %cst_26 [1] : vector<2x8x32xf32> to vector<2x32xf32>
    %62 = arith.negf %15 : vector<2x32xf32>
    %63 = math.exp %62 : vector<2x32xf32>
    %cst_27 = arith.constant 1.000000e+00 : f32
    %64 = vector.broadcast %cst_27 : f32 to vector<2x32xf32>
    %65 = arith.addf %64, %63 : vector<2x32xf32>
    %66 = arith.divf %64, %65 : vector<2x32xf32>
    %67 = arith.mulf %66, %6 : vector<2x32xf32>
    %68 = arith.index_cast %arg0 : i32 to index
    %c1 = arith.constant 1 : index
    %69 = memref.load %arg1[%68, %c1] : memref<2x6xf32, #tpu.memory_space<smem>>
    %70 = vector.broadcast %69 : f32 to vector<2x32xf32>
    %71 = arith.mulf %70, %3 : vector<2x32xf32>
    %72 = arith.index_cast %arg0 : i32 to index
    %c2 = arith.constant 2 : index
    %73 = memref.load %arg1[%72, %c2] : memref<2x6xf32, #tpu.memory_space<smem>>
    %74 = vector.broadcast %73 : f32 to vector<2x32xf32>
    %75 = arith.mulf %74, %21 : vector<2x32xf32>
    %76 = arith.addf %71, %75 : vector<2x32xf32>
    %77 = arith.index_cast %arg0 : i32 to index
    %c3 = arith.constant 3 : index
    %78 = memref.load %arg1[%77, %c3] : memref<2x6xf32, #tpu.memory_space<smem>>
    %79 = vector.broadcast %78 : f32 to vector<2x32xf32>
    %80 = arith.mulf %79, %41 : vector<2x32xf32>
    %81 = arith.addf %76, %80 : vector<2x32xf32>
    %82 = arith.index_cast %arg0 : i32 to index
    %c4 = arith.constant 4 : index
    %83 = memref.load %arg1[%82, %c4] : memref<2x6xf32, #tpu.memory_space<smem>>
    %84 = vector.broadcast %83 : f32 to vector<2x32xf32>
    %85 = arith.mulf %84, %61 : vector<2x32xf32>
    %86 = arith.addf %81, %85 : vector<2x32xf32>
    %87 = arith.index_cast %arg0 : i32 to index
    %c5 = arith.constant 5 : index
    %88 = memref.load %arg1[%87, %c5] : memref<2x6xf32, #tpu.memory_space<smem>>
    %89 = vector.broadcast %88 : f32 to vector<2x32xf32>
    %90 = arith.mulf %89, %67 : vector<2x32xf32>
    %91 = arith.addf %86, %90 : vector<2x32xf32>
    %c0_28 = arith.constant 0 : index
    %c0_29 = arith.constant 0 : index
    %92 = vector.load %arg9[%c0_28, %c0_29] : memref<2x32xf32, #tpu.memory_space<vmem>>, vector<2x32xf32>
    tpu.vector_store %arg9[%c0_28, %c0_29], %91 {strides = array<i32>} : memref<2x32xf32, #tpu.memory_space<vmem>>, vector<2x32xf32>,
    %c0_30 = arith.constant 0 : index
    %c0_31 = arith.constant 0 : index
    %c0_32 = arith.constant 0 : index
    %93 = vector.load %arg8[%c0_30, %c0_31, %c0_32] : memref<1x2x32xf32, #tpu.memory_space<vmem>>, vector<1x2x32xf32>
    %94 = vector.shape_cast %93 : vector<1x2x32xf32> to vector<2x32xf32>
    %95 = vector.shape_cast %91 : vector<2x32xf32> to vector<1x2x32xf32>
    tpu.vector_store %arg8[%c0_30, %c0_31, %c0_32], %95 {strides = array<i32>} : memref<1x2x32xf32, #tpu.memory_space<vmem>>, vector<1x2x32xf32>,
    return
  }
  func.func @transform_0(%arg0: i32, %arg1: memref<2x6xf32, #tpu.memory_space<smem>>) -> (i32, i32) {
    %c0_i32 = arith.constant 0 : i32
    %c0_i32_0 = arith.constant 0 : i32
    %c0_i32_1 = arith.constant 0 : i32
    return %c0_i32, %c0_i32_0 : i32, i32
  }
  func.func @transform_1(%arg0: i32, %arg1: memref<2x6xf32, #tpu.memory_space<smem>>) -> (i32, i32, i32) {
    %c0_i32 = arith.constant 0 : i32
    %c0_i32_0 = arith.constant 0 : i32
    %c0_i32_1 = arith.constant 0 : i32
    %c0_i32_2 = arith.constant 0 : i32
    return %c0_i32, %c0_i32_0, %c0_i32_1 : i32, i32, i32
  }
  func.func @transform_2(%arg0: i32, %arg1: memref<2x6xf32, #tpu.memory_space<smem>>) -> (i32, i32) {
    %c0_i32 = arith.constant 0 : i32
    %c0_i32_0 = arith.constant 0 : i32
    %c0_i32_1 = arith.constant 0 : i32
    return %c0_i32, %c0_i32_0 : i32, i32
  }
  func.func @transform_3(%arg0: i32, %arg1: memref<2x6xf32, #tpu.memory_space<smem>>) -> (i32, i32, i32) {
    %c0_i32 = arith.constant 0 : i32
    %c0_i32_0 = arith.constant 0 : i32
    %c0_i32_1 = arith.constant 0 : i32
    %c0_i32_2 = arith.constant 0 : i32
    return %c0_i32, %c0_i32_0, %c0_i32_1 : i32, i32, i32
  }
  func.func @transform_4(%arg0: i32, %arg1: memref<2x6xf32, #tpu.memory_space<smem>>) -> (i32, i32, i32) {
    %c0_i32 = arith.constant 0 : i32
    %c0_i32_0 = arith.constant 0 : i32
    %c0_i32_1 = arith.constant 0 : i32
    return %arg0, %c0_i32, %c0_i32_0 : i32, i32, i32
  }
  func.func @transform_5(%arg0: i32, %arg1: memref<2x6xf32, #tpu.memory_space<smem>>) -> (i32, i32, i32) {
    %c0_i32 = arith.constant 0 : i32
    %c0_i32_0 = arith.constant 0 : i32
    %c0_i32_1 = arith.constant 0 : i32
    return %arg0, %c0_i32, %c0_i32_0 : i32, i32, i32
  }
  func.func @transform_6(%arg0: i32, %arg1: memref<2x6xf32, #tpu.memory_space<smem>>) -> (i32, i32, i32) {
    %c0_i32 = arith.constant 0 : i32
    %c0_i32_0 = arith.constant 0 : i32
    %c0_i32_1 = arith.constant 0 : i32
    return %arg0, %c0_i32, %c0_i32_0 : i32, i32, i32
  }
}

</mosaic_0001>

<bundles_post_ra>
// kernel: tpu_custom_call.1
= control target key start
LH: loop header
LB: loop body
LE: loop exit
PB: predicated region body
PF: predicated region fallthrough
CT: control target
= control target key end

     0   :  { %s1120_s27 = smov [#allocation4]   ;;  %s1441_s0 = inlined_call_operand.hbm [shape: f32[2,6], index: 0, kind: input, shape index: {}]   ;;  %s1442_s1 = inlined_call_operand.hbm [shape: f32[2,32], index: 1, kind: input, shape index: {}]   ;;  %s1443_s2 = inlined_call_operand.hbm [shape: f32[2,8,32], index: 2, kind: input, shape index: {}]   ;;  %s1444_s3 = inlined_call_operand.vmem [shape: f32[2,32], index: 3, kind: input, shape index: {}]   ;;  %s1445_s4 = inlined_call_operand.hbm [shape: f32[2,8,32], index: 4, kind: input, shape index: {}]   ;;  %s1446_s5 = inlined_call_operand.hbm [shape: f32[2,32,128], index: 5, kind: input, shape index: {}]   ;;  %s1447_s6 = inlined_call_operand.vmem [shape: f32[2,1,32], index: 6, kind: input, shape index: {}]   ;;  %s1448_s7 = inlined_call_operand.hbm [shape: f32[2,2,32], index: 7, kind: output, shape index: {}]  }
   0x1   :  { %s13_s26 = sshll.u32 %s1441_s0, 4  ;;  %s14_s26 = int_to_ptr.hbm [resolvable:$true] %s13_s26 }
   0x2   :  { %16 = dma.hbm_to_smem %s14_s26, 32, %s1120_s27, [#allocation3] }
   0x3   :  { %1086 = dma.done.wait [#allocation3], 32 }
   0x4   :  { %1087 = vsyncadd [#allocation3], 4294967264 }
   0x5   :  { %19 = sfence }
   0x6   :  { %20 = vsyncpa [#allocation6], 0 }
   0x7   :  { %21 = vsyncpa [#allocation9], 0 }
   0x8   :  { %22 = vsyncpa [#allocation12], 0 }
   0x9   :  { %24 = vsyncpa [#allocation12 + $0x1], 0 }
   0xa   :  { %25 = vsyncpa [#allocation7], 0 }
   0xb   :  { %27 = vsyncpa [#allocation7 + $0x1], 0  ;;  %s1173_s28 = smov 0   ;;  %s1175_s29 = smov 0  }
   0xc   :  { %s1177_s30 = smov 0   ;;  %s1179_s8 = smov 0  }
   0xd LB: > { %s1194_s0 = sadd.s32 4294967295, %s1118_s8   ;;  %s782_s9 = sadd.s32 4294967294, %s1118_s8   ;;  %s1118_s8 = sphi %s1179_s8, %s1464_s8   ;;  %s1114_s30 = sphi %s1177_s30, %s1463_s30   ;;  %s1110_s29 = sphi %s1175_s29, %s1462_s29   ;;  %s1106_s28 = sphi %s1173_s28, %s1461_s28  }
   0xe   : > { %p137_p0 = scmp.ne.s32.totalorder %s1110_s29, %s1106_s28  ;;  %p138_p1 = scmp.eq.s32.totalorder %s1194_s0, 0 }
   0xf   : > { %p187_p2 = scmp.eq.s32.totalorder %s1194_s0, 1  ;;  %p193_p3 = scmp.eq.s32.totalorder %s782_s9, 1 }
  0x10   : > { %p1203_p4 = por %p138_p1, %p137_p0  ;;  %p783_p5 = scmp.ge.s32.totalorder %s1118_s8, 1 }
  0x11   : > { %p1208_p6 = por %p193_p3, %p137_p0  ;;  %p200_p7 = scmp.lt.s32.totalorder %s1118_s8, 3 }
  0x12   : > { %s223_s14 = sshll.u32 %s1443_s2, 4  ;;  %s1121_s16 = smov [#allocation8]   ;;  %s224_s14 = int_to_ptr.hbm [resolvable:$true] %s223_s14 }
  0x13   : > { %p1217_p9 = pnand %p783_p5, %p200_p7  ;;  %s225_s17 = sshll.u32 %s1121_s16, 4  ;;  %s226_s17 = int_to_ptr.vmem [resolvable:$true] %s225_s17 }
  0x14   : > { %s212_s21 = sshll.u32 %s1442_s1, 4  ;;  %s1449_s22 = smov 128   ;;  %s213_s21 = int_to_ptr.hbm [resolvable:$true] %s212_s21 }
  0x15   : > { %p822_p10 = pneg %p1217_p9  ;;  %s1450_s23 = smov 8  }
  0x16   : > { %s1124_s24 = smov [#allocation5]   ;;  %s240_s9 = sshll.u32 %s1445_s4, 4  ;;  %s241_s9 = int_to_ptr.hbm [resolvable:$true] %s240_s9 }
  0x17   : > { %p1225_p11 = pnand %p822_p10, %p138_p1  ;;  %s214_s25 = sshll.u32 %s1124_s24, 4  ;;  %s215_s25 = int_to_ptr.vmem [resolvable:$true] %s214_s25 }
  0x18   : > { %s1125_s12 = smov [#allocation10]   ;;  %p131_p0 = scmp.ne.s32.totalorder %s1114_s30, %s1110_s29 }
  0x19   : > { %828 = dma.hbm_to_vmem [thread:$0]  (!%p1225_p11), %s224_s14, 256, %s226_s17, [#allocation9], %s1449_s22, %s1449_s22, %s1450_s23  }
  0x1a   : > { %825 = dma.hbm_to_vmem [thread:$0]  (!%p1225_p11), %s213_s21, 32, %s215_s25, [#allocation6]  }
  0x1b   : > { %s242_s13 = sshll.u32 %s1125_s12, 4  ;;  %s1244_s14 = sadd.s32 1, %s1118_s8   ;;  %s243_s13 = int_to_ptr.vmem [resolvable:$true] %s242_s13 }
  0x1c   : > { %831 = dma.hbm_to_vmem [thread:$0]  (!%p1225_p11), %s241_s9, 256, %s243_s13, [#allocation9], %s1449_s22, %s1449_s22, %s1450_s23  }
  0x1d   : > { %s121_s16 = ssub.s32 %s1118_s8, %s1244_s14  ;;  %s124_s17 = sadd.s32 1, %s1114_s30 }
  0x1e   : > { %p122_p13 = scmp.eq.s32.totalorder %s121_s16, 0  ;;  %p132_p3 = scmp.eq.s32.totalorder %s1118_s8, 0 }
  0x1f   : > { %p1262_p5 = por %p187_p2, %p131_p0  ;;  %p843_p7 = scmp.lt.s32.totalorder %s1118_s8, 2 }
  0x20   : > { %s1258_s19 = scalar_select %p122_p13, %s1114_s30, %s124_s17  }
  0x21   : > { %s256_s21 = sand.u32 1, %s1114_s30   ;;  %s805_s18 = sshll.u32 %s1118_s8, 5 }
  0x22   : > { %p133_p10 = por %p132_p3, %p131_p0  ;;  %s788_s24 = sshll.u32 %s256_s21, 5 }
  0x23   : > { %s265_s27 = scalar_lea.hbm %s1446_s5, %s805_s18  ;;  %s260_s12 = scalar_lea.vmem [#allocation11], %s788_s24 }
  0x24   : > { %s266_s9 = sshll.u32 %s265_s27, 4  ;;  %s268_s13 = sshll.u32 %s260_s12, 4  ;;  %s267_s9 = int_to_ptr.hbm [resolvable:$true] %s266_s9  ;;  %s269_s13 = int_to_ptr.vmem [resolvable:$true] %s268_s13 }
  0x25   : > { %p1272_p11 = pnand %p843_p7, %p133_p10  ;;  %s257_s17 = scalar_lea.sflag [#allocation12], %s256_s21 }
  0x26   : > { %s1012_s22 = sshra.s32 %s267_s9, 4  ;;  %s1019_s24 = scalar_lea.hbm %s1446_s5, 64  ;;  %s1013_s22 = int_to_ptr.hbm [resolvable:$true] %s1012_s22 }
  0x27   : > { %s1014_s23 = scalar_lea.hbm %s1013_s22, 32  ;;  %p1016_p13 = pneg %p1272_p11 }
  0x28   : > { %p1015_p2 = scmp.ne.s32.totalorder %s1013_s22, %s1014_s23  ;;  %p1020_p7 = scmp.lt.s32.totalorder %s1013_s22, %s1446_s5 }
  0x29   : > { %p1021_p10 = scmp.lt.s32.totalorder %s1019_s24, %s1014_s23 }
  0x2a   : > { %p1017_p0 = pnand %p1016_p13, %p1015_p2 }
  0x2b   : > { %p1022_p12 = por %p1021_p10, %p1020_p7 }
  0x2c   : > { %p1018_p3 = pneg %p1017_p0 }
  0x2e   : > { %p1023_p8 = pnand %p1022_p12, %p1018_p3 }
  0x30   : > { %1026 = shalt.err (!%p1023_p8)
}
  0x31   : > { %s1457_s21 = smov 8   ;;  %s1458_s12 = smov 128  }
  0x32   : > { %835 = dma.hbm_to_vmem [thread:$0]  (!%p1272_p11), %s267_s9, 512, %s269_s13, %s257_s17, %s1458_s12, %s1458_s12, %s1457_s21  }
  0x33   : > { %286 = sbr.rel (%p1217_p9) target bundleno = 968 (0x3c8), region = 44 }
  0x38   : > { %1089 = dma.done.wait (%p138_p1), [#allocation6], 32  }
  0x39   : > { %1091 = vsyncadd (%p138_p1), [#allocation6], 4294967264 }
  0x3a   : > { %1093 = dma.done.wait (%p138_p1), [#allocation9], 512  }
  0x3b   : > { %1095 = vsyncadd (%p138_p1), [#allocation9], 4294966784  ;;  %s1300_s22 = sand.u32 1, %s1110_s29  }
  0x3c   : > { %s795_s15 = sshll.u32 %s1300_s22, 5  ;;  %s304_s23 = scalar_lea.sflag [#allocation12], %s1300_s22 }
  0x3d   : > { %s307_s9 = scalar_lea.vmem [#allocation11], %s795_s15 }
  0x3e   : > { %1097 = dma.done.wait (%p1203_p4), %s304_s23, 512  }
  0x3f   : > { %1099 = vsyncadd (%p1203_p4), %s304_s23, 4294966784  ;;  %s796_s13 = sshll.u32 %s1300_s22, 1  ;;  %p340_p8 = scmp.lt.s32.totalorder %s1194_s0, 1 }
  0x40   : > { %s1317_s24 = scalar_lea.vmem [#allocation13], %s796_s13  ;;  %p1459_p1 = scmp.ne.s32.totalorder %s1194_s0, 0 }
  0x41   : > { %s1311_s16 = scalar_select %p340_p8, %s1194_s0, 1 }
  0x42   : > { %346 = sbr.rel (%p1459_p1) target bundleno = 73 (0x49), region = 64 }
  0x43   : > { %s342_s25 = scalar_lea.vmem %s1447_s6, %s1311_s16 }
  0x47   : > { %v347_v0 = vld [vmem:[#allocation5] sm:$0x3]  ;;  %vm348_vm0 = vcmask 254976  }
  0x48   : > { %349 = vst.msk [vmem:[#allocation2] sm:$0x3] %vm348_vm0, %v347_v0 }
  0x49 PF: > { %v359_v1 = vld [vmem:[%s307_s9 + $0x18] sm:$0xff]  ;;  %v358_v2 = vld [vmem:[%s307_s9 + $0x10] sm:$0xff]  ;;  %v357_v4 = vld [vmem:[%s307_s9 + $0x8] sm:$0xff]  ;;  %s1126_s10 = smov 64   ;;  %s1127_s26 = smov 32   ;;  %vm360_vm1 = vcmask 261120   ;;  %v424_v30 = vlaneseq }
  0x4a   : > { %376 = vmatpush.msra.mxu0 %v359_v1  ;;  %v1321_v3 = vld [vmem:[#allocation10] sm:$0xff]  ;;  %v1324_v5 = vld [vmem:[#allocation8] sm:$0xff]  ;;  %v1330_v8 = vld [vmem:[#allocation10 + $0x8] sm:$0xff]  ;;  %s1128_s27 = smov 96   ;;  %vm428_vm2 = vcmask 1041409   ;;  %vm431_vm3 = vcmask 58368  }
  0x4b   : > { %497 = vrot.lane.b32.xlu1 %v1321_v3, %s1126_s10  ;;  %398 = vrot.lane.b32.xlu0 %v1324_v5, %s1127_s26  ;;  %v356_v6 = vld [vmem:[%s307_s9] sm:$0xff]  ;;  %v1334_v9 = vld [vmem:[#allocation8 + $0x8] sm:$0xff]  ;;  %v1349_v32 = vand.u32 127, %v424_v30  ;;  %v1129_v48 = vmov 0   ;;  %s1379_s15 = sshll.u32 %s1194_s0, 7  ;;  %s802_s16 = sshll.u32 %s1194_s0, 1 }
  0x4c   : > { %377 = vmatpush.msra.mxu0 %v358_v2  ;;  %891 = vset.pattern.permute.xlu2 %v1129_v48  ;;  %s644_s23 = sadd.s32 5, %s1379_s15  ;;  %s615_s13 = sadd.s32 1, %s1379_s15  ;;  %vm653_vm8 = vcmask 254976  }
  0x4d   : > { %890 = vset.pattern.permute.xlu1 %v1129_v48  ;;  %892 = vset.pattern.permute.xlu0 %v1129_v48  ;;  %s645_s9 = sld [smem:[#allocation4 + %s644_s23]]  ;;  %s619_s17 = sadd.s32 2, %s1379_s15 }
  0x4e   : > { %378 = vmatpush.msra.mxu0 %v357_v4  ;;  %v355_v4 = vld [vmem:[%s1444_s3] sm:$0x3]  ;;  %s624_s18 = sadd.s32 3, %s1379_s15  ;;  %s620_s21 = sld [smem:[#allocation4 + %s619_s17]] }
  0x4f   : > { %v1328_v7 = vld [vmem:[#allocation2] sm:$0x3]  ;;  %s625_s12 = sld [smem:[#allocation4 + %s624_s18]]  ;;  %s634_s23 = sadd.s32 4, %s1379_s15 }
  0x50   : > { %379 = vmatpush.msra.mxu0 %v356_v6  ;;  %s669_s17 = sshll.u32 %s1317_s24, 4  ;;  %s657_s0 = scalar_lea.sflag [#allocation7], %s1300_s22  ;;  %s670_s17 = int_to_ptr.vmem [resolvable:$true] %s669_s17 }
  0x51   : > { %798 = vmatmul.msk.f32.vlgmr.msra.gmra.mxu0 %vm360_vm1, %v1328_v7 }
  0x53   : > { %499 = vrot.lane.b32.xlu1 %v1330_v8, %s1126_s10  ;;  %400 = vrot.lane.b32.xlu0 %v1334_v9, %s1127_s26 }
  0xbd   : > { %v498_v10 = vpop.permute.xlu1 %497  ;;  %v399_v11 = vpop.permute.xlu0 %398 }
  0xc5   : > { %v500_v15 = vpop.permute.xlu1 %499  ;;  %v401_v20 = vpop.permute.xlu0 %400 }
  0xce   : > { %v1339_v12 = vpop.f32.mrf.mxu0 }
  0xcf   : > { %v392_v13 = vperm.slane %v1339_v12, 0  ;;  %v391_v14 = vrot.slane %v1339_v12, 1  ;;  %v799_v6 = vmul.f32 -1.442695, %v1339_v12 }
  0xd1   : > { %v393_v16 = vperm.slane %v391_v14, 0  ;;  %v503_v17 = vmul.f32 %v498_v10, %v392_v13  ;;  %v404_v18 = vmul.f32 %v399_v11, %v392_v13 }
  0xd3   : > { %v504_v19 = vmul.f32 %v500_v15, %v393_v16  ;;  %507 = vrot.lane.b32.xlu0 %v503_v17, %s1126_s10  ;;  %408 = vrot.lane.b32.xlu2 %v404_v18, %s1128_s27  ;;  %v405_v21 = vmul.f32 %v401_v20, %v393_v16 }
  0xd5   : > { %509 = vrot.lane.b32.xlu1 %v504_v19, %s1126_s10  ;;  %s616_s10 = sld [smem:[#allocation4 + %s615_s13]]  ;;  %s667_s13 = scalar_lea.hbm %s1448_s7, %s802_s16 }
  0xd6   : > { %s671_s18 = sshll.u32 %s667_s13, 4  ;;  %s672_s18 = int_to_ptr.hbm [resolvable:$true] %s671_s18 }
  0xdb   : > { %410 = vrot.lane.b32.xlu2 %v405_v21, %s1128_s27 }
 0x12d   : > { %v409_v22 = vpop.permute.xlu2 %408 }
 0x12e   : > { %v414_v23 = vsel %vm360_vm1, %v409_v22, 0.0 }
 0x12f   : > { %415 = vadd.xlane.f32.xlu2 %v414_v23 }
 0x135   : > { %v411_v24 = vpop.permute.xlu2 %410 }
 0x136   : > { %v417_v25 = vsel %vm360_vm1, %v411_v24, 0.0 }
 0x137   : > { %418 = vadd.xlane.f32.xlu0 %v417_v25 }
 0x145   : > { %v508_v26 = vpop.permute.xlu0 %507 }
 0x146   : > { %v513_v27 = vsel %vm360_vm1, %v508_v26, 0.0 }
 0x147   : > { %514 = vadd.xlane.f32.xlu1 %v513_v27  ;;  %v510_v28 = vpop.permute.xlu1 %509 }
 0x148   : > { %v516_v29 = vsel %vm360_vm1, %v510_v28, 0.0 }
 0x149   : > { %517 = vadd.xlane.f32.xlu2 %v516_v29 }
 0x1a2   : > { %v416_v31 = vpop.xlane.xlu2 %415 }
 0x1a3   : > { %v420_v33 = vmul.f32 0.17677669, %v416_v31 }
 0x1a5   : > { %v426_v36 = vperm.slane %v420_v33, %v1349_v32 }
 0x1aa   : > { %v419_v34 = vpop.xlane.xlu0 %418 }
 0x1ab   : > { %v421_v35 = vmul.f32 0.17677669, %v419_v34 }
 0x1ad   : > { %v427_v37 = vperm.slane %v421_v35, %v1349_v32 }
 0x1af   : > { %v429_v38 = vsel %vm428_vm2, %v427_v37, %v426_v36  ;;  %v646_v37 = vstv %s645_s9  ;;  %s635_s9 = sld [smem:[#allocation4 + %s634_s23]] }
 0x1b0   : > { %v432_v39 = vsel %vm431_vm3, %v429_v38, -inf }
 0x1b1   : > { %433 = vmax.xlane.f32.xlu2 %v432_v39 }
 0x1ba   : > { %v515_v40 = vpop.xlane.xlu1 %514 }
 0x1bb   : > { %v519_v41 = vmul.f32 0.17677669, %v515_v40 }
 0x1bc   : > { %v518_v42 = vpop.xlane.xlu2 %517 }
 0x1bd   : > { %v520_v43 = vmul.f32 0.17677669, %v518_v42  ;;  %v523_v44 = vperm.slane %v519_v41, %v1349_v32 }
 0x1bf   : > { %v524_v45 = vperm.slane %v520_v43, %v1349_v32 }
 0x1c1   : > { %v525_v46 = vsel %vm428_vm2, %v524_v45, %v523_v44 }
 0x1c2   : > { %v527_v47 = vsel %vm431_vm3, %v525_v46, -inf }
 0x1c3   : > { %528 = vmax.xlane.f32.xlu0 %v527_v47 }
 0x224   : > { %v434_v49 = vpop.xlane.xlu2 %433 }
 0x225   : > { %v436_v50 = vperm.slane %v434_v49, 0  ;;  %v437_v51 = vperm.slane %v434_v49, 1 }
 0x227   : > { %v440_v52 = vsub.f32 %v420_v33, %v436_v50  ;;  %v441_v53 = vsub.f32 %v421_v35, %v437_v51 }
 0x229   : > { %v442_v54 = vmul.f32 1.442695, %v440_v52  ;;  %v444_v55 = vmul.f32 1.442695, %v441_v53 }
 0x22b   : > { %894 = vpow2.f32 %v442_v54 }
 0x22c   : > { %896 = vpow2.f32 %v444_v55 }
 0x231   : > { %v1359_v56 = vpop.eup %894 }
 0x232   : > { %v1361_v57 = vpop.eup %896  ;;  %449 = vperm.xlu1 %890, %v1359_v56  }
 0x233   : > { %452 = vperm.xlu2 %891, %v1361_v57  }
 0x236   : > { %v529_v58 = vpop.xlane.xlu0 %528 }
 0x237   : > { %v531_v59 = vperm.slane %v529_v58, 0  ;;  %v532_v60 = vperm.slane %v529_v58, 1 }
 0x239   : > { %v535_v61 = vsub.f32 %v519_v41, %v531_v59  ;;  %v536_v62 = vsub.f32 %v520_v43, %v532_v60 }
 0x23b   : > { %v537_v63 = vmul.f32 1.442695, %v535_v61  ;;  %v539_v0 = vmul.f32 1.442695, %v536_v62 }
 0x23d   : > { %898 = vpow2.f32 %v537_v63 }
 0x23e   : > { %900 = vpow2.f32 %v539_v0 }
 0x23f   : > { %902 = vpow2.f32 %v799_v6 }
 0x243   : > { %v899_v1 = vpop.eup %898 }
 0x244   : > { %v901_v2 = vpop.eup %900  ;;  %544 = vperm.xlu0 %892, %v899_v1  }
 0x245   : > { %547 = vperm.xlu1 %890, %v901_v2   ;;  %v903_v17 = vpop.eup %902 }
 0x246   : > { %v593_v18 = vadd.f32 1.0, %v903_v17 }
 0x248   : > { %904 = vrcp.f32 %v593_v18  ;;  %v605_v30 = vand.u32 2147483648, %v593_v18  ;;  %vm599_vm5 = vweird.f32 %v593_v18  ;;  %v603_v31 = vand.u32 2147483647, %v593_v18 }
 0x24a   : > { %v606_v33 = vor.u32 1.1754944e-38, %v605_v30  ;;  %vm604_vm7 = vcmp.eq.f32.partialorder %v603_v31, 8.507059e+37 }
 0x24c   : > { %610 = vrot.lane.b32.xlu0 %v355_v4, %s1128_s27 }
 0x24e   : > { %v905_v22 = vpop.eup %904 }
 0x24f   : > { %v595_v26 = vmul.f32 %v905_v22, %v593_v18  ;;  %vm600_vm4 = vweird.f32 %v905_v22 }
 0x250   : > { %vm601_vm6 = vmor %vm599_vm5, %vm600_vm4 }
 0x251   : > { %v596_v27 = vsub.f32 1.0, %v595_v26 }
 0x253   : > { %v597_v28 = vmul.f32 %v905_v22, %v596_v27 }
 0x255   : > { %v598_v29 = vadd.f32 %v905_v22, %v597_v28 }
 0x28d   : > { %v453_v10 = vpop.permute.xlu2 %452 }
 0x28e   : > { %v455_v13 = vperm.slane %v453_v10, %v1349_v32 }
 0x2a4   : > { %v450_v11 = vpop.permute.xlu1 %449 }
 0x2a5   : > { %v454_v14 = vperm.slane %v450_v11, %v1349_v32 }
 0x2a7   : > { %v456_v15 = vsel %vm428_vm2, %v455_v13, %v454_v14 }
 0x2a8   : > { %v458_v16 = vsel %vm431_vm3, %v456_v15, 0.0 }
 0x2a9   : > { %459 = vadd.xlane.f32.xlu2 %v458_v16 }
 0x2b6   : > { %v545_v19 = vpop.permute.xlu0 %544 }
 0x2b7   : > { %v549_v20 = vperm.slane %v545_v19, %v1349_v32  ;;  %v548_v21 = vpop.permute.xlu1 %547 }
 0x2b8   : > { %v550_v23 = vperm.slane %v548_v21, %v1349_v32  ;;  %v602_v32 = vsel %vm601_vm6, %v905_v22, %v598_v29  ;;  %v617_v21 = vstv %s616_s10  ;;  %s1056_s10 = sshra.s32 %s672_s18, 4  ;;  %s1057_s10 = int_to_ptr.hbm [resolvable:$true] %s1056_s10 }
 0x2b9   : > { %v607_v35 = vsel %vm604_vm7, %v606_v33, %v602_v32  ;;  %v636_v33 = vstv %s635_s9  ;;  %p1063_p11 = scmp.lt.s32.totalorder %s1057_s10, %s1448_s7 }
 0x2ba   : > { %v551_v24 = vsel %vm428_vm2, %v550_v23, %v549_v20  ;;  %v621_v23 = vstv %s620_s21 }
 0x2bb   : > { %v553_v25 = vsel %vm431_vm3, %v551_v24, 0.0 }
 0x2bc   : > { %554 = vadd.xlane.f32.xlu1 %v553_v25 }
 0x2be   : > { %v611_v34 = vpop.permute.xlu0 %610 }
 0x2bf   : > { %v613_v36 = vmul.f32 %v611_v34, %v607_v35 }
 0x2c1   : > { %v647_v38 = vmul.f32 %v646_v37, %v613_v36 }
 0x2d5   : > { %649 = vrot.lane.b32.xlu1 %v647_v38, %s1127_s26  ;;  %s1058_s26 = scalar_lea.hbm %s1057_s10, 2 }
 0x2d6   : > { %p1059_p4 = scmp.ne.s32.totalorder %s1057_s10, %s1058_s26 }
 0x2d8   : > { %p1060_p9 = pnand %p1059_p4, %p1262_p5 }
 0x2da   : > { %p1061_p12 = pneg %p1060_p9 }
 0x31c   : > { %v460_v39 = vpop.xlane.xlu2 %459 }
 0x31d   : > { %906 = vrcp.f32 %v460_v39 }
 0x323   : > { %v907_v40 = vpop.eup %906 }
 0x324   : > { %v463_v41 = vperm.slane %v907_v40, 0  ;;  %v464_v43 = vperm.slane %v907_v40, 1 }
 0x326   : > { %v467_v42 = vmul.f32 %v1359_v56, %v463_v41  ;;  %v468_v45 = vmul.f32 %v1361_v57, %v464_v43 }
 0x328   : > { %471 = vperm.xlu0 %892, %v467_v42  }
 0x32f   : > { %v555_v44 = vpop.xlane.xlu1 %554 }
 0x330   : > { %908 = vrcp.f32 %v555_v44  ;;  %476 = vperm.xlu0 %892, %v468_v45  }
 0x336   : > { %v909_v46 = vpop.eup %908 }
 0x337   : > { %v559_v47 = vperm.slane %v909_v46, 1  ;;  %v558_v48 = vperm.slane %v909_v46, 0 }
 0x339   : > { %v563_v49 = vmul.f32 %v901_v2, %v559_v47  ;;  %v562_v50 = vmul.f32 %v899_v1, %v558_v48  ;;  %v893_v2 = vld [vmem:[%s342_s25] ss:$0 sm:$0xff] }
 0x33a   : > { %v388_v14 = vadd.f32 %v893_v2, %v1339_v12  ;;  %v618_v12 = vmul.f32 %v617_v21, %v1328_v7 }
 0x33b   : > { %571 = vperm.xlu2 %891, %v563_v49   ;;  %566 = vperm.xlu0 %892, %v562_v50  }
 0x33c   : > { %v389_v22 = vmax.f32 %v388_v14, 0.0 }
 0x33e   : > { %v622_v29 = vmul.f32 %v621_v23, %v389_v22 }
 0x340   : > { %v623_v36 = vadd.f32 %v622_v29, %v618_v12 }
 0x347   : > { %v650_v41 = vpop.permute.xlu1 %649 }
 0x395   : > { %v572_v51 = vpop.permute.xlu2 %571 }
 0x396   : > { %v575_v54 = vmul.f32 %v572_v51, %v1330_v8 }
 0x398   : > { %v583_v57 = vsel %vm360_vm1, %v575_v54, 0.0 }
 0x399   : > { %v584_v60 = vrot.slane %v583_v57, 4 }
 0x39a   : > { %v472_v52 = vpop.permute.xlu0 %471 }
 0x39b   : > { %v479_v53 = vmul.f32 %v472_v52, %v1324_v5  ;;  %v585_v5 = vadd.f32 %v584_v60, %v583_v57 }
 0x39d   : > { %v481_v55 = vsel %vm360_vm1, %v479_v53, 0.0 }
 0x39e   : > { %v482_v56 = vrot.slane %v481_v55, 4 }
 0x3a0   : > { %v483_v61 = vadd.f32 %v482_v56, %v481_v55 }
 0x3a2   : > { %v477_v58 = vpop.permute.xlu0 %476  ;;  %v484_v0 = vrot.slane %v483_v61, 2 }
 0x3a3   : > { %v480_v59 = vmul.f32 %v477_v58, %v1334_v9  ;;  %v586_v9 = vrot.slane %v585_v5, 2 }
 0x3a4   : > { %v485_v4 = vadd.f32 %v484_v0, %v483_v61 }
 0x3a5   : > { %v488_v62 = vsel %vm360_vm1, %v480_v59, 0.0  ;;  %v587_v16 = vadd.f32 %v586_v9, %v585_v5 }
 0x3a6   : > { %v489_v63 = vrot.slane %v488_v62, 4  ;;  %v486_v17 = vrot.slane %v485_v4, 1 }
 0x3a7   : > { %v588_v24 = vrot.slane %v587_v16, 1 }
 0x3a8   : > { %v490_v1 = vadd.f32 %v489_v63, %v488_v62  ;;  %v487_v25 = vadd.f32 %v486_v17, %v485_v4 }
 0x3a9   : > { %v589_v30 = vadd.f32 %v588_v24, %v587_v16 }
 0x3aa   : > { %v491_v8 = vrot.slane %v490_v1, 2 }
 0x3ab   : > { %v638_v37 = vmul.f32 %v636_v33, %v589_v30 }
 0x3ac   : > { %v492_v6 = vadd.f32 %v491_v8, %v490_v1 }
 0x3ad   : > { %v567_v10 = vpop.permute.xlu0 %566 }
 0x3ae   : > { %v574_v11 = vmul.f32 %v567_v10, %v1321_v3  ;;  %v493_v13 = vrot.slane %v492_v6, 1  ;;  %v626_v3 = vstv %s625_s12  ;;  %s1062_s12 = scalar_lea.hbm %s1448_s7, 4 }
 0x3af   : > { %v627_v31 = vmul.f32 %v626_v3, %v487_v25  ;;  %p1064_p2 = scmp.lt.s32.totalorder %s1062_s12, %s1058_s26 }
 0x3b0   : > { %v576_v15 = vsel %vm360_vm1, %v574_v11, 0.0  ;;  %v494_v19 = vadd.f32 %v493_v13, %v492_v6 }
 0x3b1   : > { %v577_v18 = vrot.slane %v576_v15, 4  ;;  %p1065_p13 = por %p1064_p2, %p1063_p11 }
 0x3b2   : > { %v628_v27 = vmul.f32 %v626_v3, %v494_v19 }
 0x3b3   : > { %v578_v20 = vadd.f32 %v577_v18, %v576_v15  ;;  %p1066_p0 = pnand %p1065_p13, %p1061_p12 }
 0x3b4   : > { %v631_v35 = vsel %vm428_vm2, %v628_v27, %v627_v31 }
 0x3b5   : > { %v579_v26 = vrot.slane %v578_v20, 2  ;;  %v633_v7 = vadd.f32 %v631_v35, %v623_v36 }
 0x3b7   : > { %v580_v28 = vadd.f32 %v579_v26, %v578_v20 }
 0x3b9   : > { %v581_v32 = vrot.slane %v580_v28, 1 }
 0x3bb   : > { %v582_v34 = vadd.f32 %v581_v32, %v580_v28 }
 0x3bd   : > { %v637_v38 = vmul.f32 %v636_v33, %v582_v34 }
 0x3bf   : > { %v641_v39 = vsel %vm428_vm2, %v638_v37, %v637_v38 }
 0x3c0   : > { %v643_v40 = vadd.f32 %v641_v39, %v633_v7 }
 0x3c2   : > { %v652_v42 = vadd.f32 %v650_v41, %v643_v40 }
 0x3c4   : > { %654 = vst.msk [vmem:[#allocation2] sm:$0x3] %vm653_vm8, %v652_v42 }
 0x3c5   : > { %655 = vst.msk [vmem:[%s1317_s24] sm:$0x3] %vm653_vm8, %v652_v42 }
 0x3c6   : > { %1069 = shalt.err (!%p1066_p0)
}
 0x3c7   : > { %820 = dma.vmem_to_hbm [thread:$0]  (%p1262_p5), %s670_s17, 32, %s672_s18, %s657_s0  }
 0x3c8 PF: > { %s683_s22 = sand.u32 1, %s1106_s28   ;;  %p1460_p3 = scmp.ge.s32.totalorder %s1118_s8, 2 }
 0x3c9   : > { %s684_s24 = scalar_lea.sflag [#allocation7], %s683_s22 }
 0x3ca   : > { %p837_p7 = pnand %p1460_p3, %p1208_p6 }
 0x3cc   : > { %p838_p10 = pneg %p837_p7 }
 0x3ce   : > { %1101 = dma.done.wait (%p838_p10), %s684_s24, 32  }
 0x3cf   : > { %1103 = vsyncadd (%p838_p10), %s684_s24, 4294967264  ;;  %p30_p8 = scmp.ge.s32.totalorder %s1244_s14, 4   ;;  %s1461_s28 = smov %s1110_s29 }
 0x3d0   : > { %s1462_s29 = smov %s1114_s30  ;;  %s1463_s30 = smov %s1258_s19 }
 0x3d1   : > { %s1464_s8 = smov %s1244_s14  ;;  %32 = sbr.rel (!%p30_p8) target bundleno = 13 (0xd), region = 109 }
 0x3d6   :  { %690 = vsyncpa [#allocation6], 1 }
 0x3d7   :  { %692 = vsyncpa [#allocation6 + $0x1], 1 }
 0x3d8   :  { %693 = vsyncpa [#allocation9], 1 }
 0x3d9   :  { %694 = vsyncpa [#allocation12], 1 }
 0x3da   :  { %696 = vsyncpa [#allocation12 + $0x1], 1 }
 0x3db   :  { %697 = vsyncpa [#allocation7], 1 }
 0x3dc   :  { %699 = vsyncpa [#allocation7 + $0x1], 1 }

</bundles_post_ra>
